<compile_context>
chip_gen: v7x
topology: tpu7x:2x2x1
jax: 0.10.0
libtpu: 0.0.40
codegen_flags: <defaults>
</compile_context>

<pallas_src>
import jax
import jax.numpy as jnp
from jax.experimental import pallas as pl
from jax.experimental.pallas import tpu as pltpu

_LANE = 128
_MIB = 1 << 20

# Generation-safe VMEM numbers: the double-buffered block budget stays well
# inside v7x's 64 MiB per-TensorCore VMEM (v5e/v6e have 128 MiB physical), and
# the scoped limit we request never approaches any generation's capacity.  At
# the default block_rows the actual footprint for this module's shapes is only
# ~13 MiB, so a larger per-generation budget would not buy extra tile size.
_BUF_BUDGET_BYTES = 36 * _MIB     # double-buffered x/out blocks + resident weight
_VMEM_LIMIT_BYTES = 56 * _MIB     # scoped-VMEM limit passed to Mosaic


def _logreg_kernel(x_ref, w_ref, b_ref, o_ref):
    """o = sigmoid(x @ w + b); f32 MXU accumulation, cast at the store.

    x_ref: [TB, K]  (VMEM tile, streamed per grid step)
    w_ref: [K,  N]  (resident across grid steps)
    b_ref: [1,  N]  (resident)
    o_ref: [TB, N]
    """
    logits = jnp.dot(x_ref[...], w_ref[...], preferred_element_type=jnp.float32)
    logits = logits + b_ref[...]                # bias broadcast over rows
    o_ref[...] = jax.nn.sigmoid(logits).astype(o_ref.dtype)


def _round_up(v, m):
    return ((v + m - 1) // m) * m


def _pick_tile_rows(n_rows, in_cols, out_cols, in_isz, out_isz,
                    weight_bytes, sublane, max_rows):
    """Largest row tile whose double-buffered (lane-padded) x + out blocks plus
    the resident weight/bias fit in the VMEM block budget."""
    per_row = 2 * (_round_up(in_cols, _LANE) * in_isz
                   + _round_up(out_cols, _LANE) * out_isz)
    fit_rows = (_BUF_BUDGET_BYTES - weight_bytes) // max(1, per_row)
    tb = min(int(max_rows), int(fit_rows), _round_up(n_rows, sublane))
    return max(sublane, (tb // sublane) * sublane)


def logistic_regression_forward(x, weight_t, bias, *, block_rows=32768,
                                out_dtype=None):
    """Forward pass of sigmoid(x @ W^T + b).

    x:        [B, D_in]
    weight_t: [D_in, D_out]  (torch Linear weight [D_out, D_in], transposed
                              ONCE at init time into the MXU-friendly layout)
    bias:     [D_out]
    """
    B, D_in = x.shape
    d_in_w, D_out = weight_t.shape
    assert d_in_w == D_in, "weight_t must be [D_in, D_out]"
    out_dtype = jnp.dtype(x.dtype if out_dtype is None else out_dtype)

    x_isz = jnp.dtype(x.dtype).itemsize
    o_isz = out_dtype.itemsize
    w_isz = jnp.dtype(weight_t.dtype).itemsize

    b2 = bias.reshape(1, D_out).astype(jnp.float32)

    # ---- small batch: single tile, no grid / pipeline machinery -------------
    if B <= 1024:
        return pl.pallas_call(
            _logreg_kernel,
            out_shape=jax.ShapeDtypeStruct((B, D_out), out_dtype),
            compiler_params=pltpu.CompilerParams(
                vmem_limit_bytes=_VMEM_LIMIT_BYTES),
        )(x, weight_t, b2)

    min_sub = max(8, 32 // x_isz)     # dtype-aware sublane multiple (f32:8, bf16:16, i8:32)
    cparams = pltpu.CompilerParams(
        dimension_semantics=("parallel",),   # shard row tiles across TCs (v7x megacore)
        vmem_limit_bytes=_VMEM_LIMIT_BYTES,
    )

    # ---- lane-dense packed path ---------------------------------------------
    f = _LANE // D_out if (0 < D_out < _LANE and _LANE % D_out == 0) else 1
    if f > 1 and B % f == 0:
        Bp, Kp, Np = B // f, f * D_in, f * D_out        # Np == 128 (lane-dense)
        # NOTE: a real module would build w_bd / b_p once at __init__; doing it
        # per call costs Kp*Np*4 bytes (negligible vs the multi-MiB x stream).
        w_bd = jnp.kron(jnp.eye(f, dtype=weight_t.dtype), weight_t)  # [Kp, Np]
        b_p = jnp.tile(b2, (1, f))                                   # [1, Np]
        x_p = x.reshape(Bp, Kp)                      # free row-major reshape

        w_bytes = Kp * Np * w_isz + Np * 4
        tbp = _pick_tile_rows(Bp, Kp, Np, x_isz, o_isz, w_bytes, min_sub,
                              max(min_sub, block_rows // f))
        out_p = pl.pallas_call(
            _logreg_kernel,
            out_shape=jax.ShapeDtypeStruct((Bp, Np), out_dtype),
            grid=(pl.cdiv(Bp, tbp),),
            in_specs=[
                pl.BlockSpec((tbp, Kp), lambda i: (i, 0)),   # streamed x tile
                pl.BlockSpec((Kp, Np), lambda i: (0, 0)),    # resident weight
                pl.BlockSpec((1, Np), lambda i: (0, 0)),     # resident bias
            ],
            out_specs=pl.BlockSpec((tbp, Np), lambda i: (i, 0)),
            compiler_params=cparams,
        )(x_p, w_bd, b_p)
        return out_p.reshape(B, D_out)               # free row-major reshape

    # ---- natural-layout fallback (D_out does not pack to 128 lanes) ---------
    w_bytes = D_in * D_out * w_isz + D_out * 4
    tb = _pick_tile_rows(B, D_in, D_out, x_isz, o_isz, w_bytes, min_sub,
                         block_rows)
    return pl.pallas_call(
        _logreg_kernel,
        out_shape=jax.ShapeDtypeStruct((B, D_out), out_dtype),
        grid=(pl.cdiv(B, tb),),
        in_specs=[
            pl.BlockSpec((tb, D_in), lambda i: (i, 0)),      # streamed x tile
            pl.BlockSpec((D_in, D_out), lambda i: (0, 0)),   # resident weight
            pl.BlockSpec((1, D_out), lambda i: (0, 0)),      # resident bias
        ],
        out_specs=pl.BlockSpec((tb, D_out), lambda i: (i, 0)),
        compiler_params=cparams,
    )(x, weight_t, b2)


if __name__ == "__main__":
    key = jax.random.PRNGKey(0)
    k_w, k_b, k1, k2, k3, k4 = jax.random.split(key, 6)

    D_in, D_out = 32, 16
    bound = 1.0 / (D_in ** 0.5)

    # torch.nn.Linear stores weight as [D_out, D_in]; transpose ONCE at init.
    weight = jax.random.uniform(k_w, (D_out, D_in), minval=-bound, maxval=bound,
                                dtype=jnp.float32)
    bias = jax.random.uniform(k_b, (D_out,), minval=-bound, maxval=bound,
                              dtype=jnp.float32)
    weight_t = jnp.asarray(weight.T)

    def ref_fn(xv):
        return jax.nn.sigmoid(xv @ weight_t + bias)

    def check(xv, **kw):
        out = jax.block_until_ready(
            logistic_regression_forward(xv, weight_t, bias, **kw))
        assert out.shape == (xv.shape[0], D_out)
        assert jnp.allclose(out, ref_fn(xv), atol=1e-5, rtol=1e-5), "mismatch"

    # 1) small batch -> grid-free single-tile path
    check(jax.random.normal(k1, (8, D_in), dtype=jnp.float32))
    # 2) large batch (multiple of 8) -> lane-dense packed path, even tiling
    check(jax.random.normal(k2, (4096, D_in), dtype=jnp.float32), block_rows=512)
    # 3) packed path with a partial last tile
    check(jax.random.normal(k3, (1992, D_in), dtype=jnp.float32), block_rows=512)
    # 4) batch not divisible by 8 -> natural-layout fallback with partial tile
    check(jax.random.normal(k4, (1001, D_in), dtype=jnp.float32), block_rows=256)

    print("KERNEL_OK")
</pallas_src>

<mosaic_0001>
module attributes {stable_mosaic.version = 11 : i64} {
  func.func @_logreg_kernel(%arg0: memref<8x32xf32, #tpu.memory_space<vmem>>, %arg1: memref<32x16xf32, #tpu.memory_space<vmem>>, %arg2: memref<1x16xf32, #tpu.memory_space<vmem>>, %arg3: memref<8x16xf32, #tpu.memory_space<vmem>>) attributes {dimension_semantics = [], scalar_prefetch = 0 : i64, scratch_operands = 0 : i64, tpu.core_type = #tpu.core_type<tc>} {
    %c0 = arith.constant 0 : index
    %c0_0 = arith.constant 0 : index
    %0 = vector.load %arg0[%c0, %c0_0] : memref<8x32xf32, #tpu.memory_space<vmem>>, vector<8x32xf32>
    %c0_1 = arith.constant 0 : index
    %c0_2 = arith.constant 0 : index
    %1 = vector.load %arg1[%c0_1, %c0_2] : memref<32x16xf32, #tpu.memory_space<vmem>>, vector<32x16xf32>
    %cst = arith.constant dense<0.000000e+00> : vector<8x16xf32>
    %2 = tpu.matmul %0, %1, %cst {dimension_numbers = #tpu.dot_dimension_numbers<[1], [0], [0], [1], [0, 0, 1, 1], [], []>} : vector<8x32xf32>, vector<32x16xf32>, vector<8x16xf32> -> vector<8x16xf32>
    %c0_3 = arith.constant 0 : index
    %c0_4 = arith.constant 0 : index
    %3 = vector.load %arg2[%c0_3, %c0_4] : memref<1x16xf32, #tpu.memory_space<vmem>>, vector<1x16xf32>
    %4 = vector.broadcast %3 : vector<1x16xf32> to vector<8x16xf32>
    %5 = arith.addf %2, %4 : vector<8x16xf32>
    %6 = arith.negf %5 : vector<8x16xf32>
    %7 = math.exp %6 : vector<8x16xf32>
    %cst_5 = arith.constant 1.000000e+00 : f32
    %8 = vector.broadcast %cst_5 : f32 to vector<8x16xf32>
    %9 = arith.addf %8, %7 : vector<8x16xf32>
    %10 = arith.divf %8, %9 : vector<8x16xf32>
    %c0_6 = arith.constant 0 : index
    %c0_7 = arith.constant 0 : index
    %11 = vector.load %arg3[%c0_6, %c0_7] : memref<8x16xf32, #tpu.memory_space<vmem>>, vector<8x16xf32>
    tpu.vector_store %arg3[%c0_6, %c0_7], %10 {strides = array<i32>} : memref<8x16xf32, #tpu.memory_space<vmem>>, vector<8x16xf32>,
    return
  }
}

</mosaic_0001>

<bundles_post_ra>
// kernel: tpu_custom_call.1
= control target key start
LH: loop header
LB: loop body
LE: loop exit
PB: predicated region body
PF: predicated region fallthrough
CT: control target
= control target key end

     0   :  { %v180_v3 = vmov 0.0|0.0   ;;  %vm181_vm0 = vmmov 0   ;;  %v182_v6 = vmov 0.0   ;;  %s234_s0 = inlined_call_operand.vmem [shape: f32[8,32], index: 0, kind: input, shape index: {}]   ;;  %s235_s1 = inlined_call_operand.vmem [shape: f32[32,16], index: 1, kind: input, shape index: {}]   ;;  %s236_s2 = inlined_call_operand.vmem [shape: f32[1,16], index: 2, kind: input, shape index: {}]   ;;  %s237_s3 = inlined_call_operand.hbm [shape: f32[8,16], index: 3, kind: output, shape index: {}]  }
   0x1   :  { %v16_v0 = vld [vmem:[%s235_s1] sm:$0xff]  ;;  %v17_v1 = vld [vmem:[%s235_s1 + $0x8] sm:$0xff]  ;;  %v18_v2 = vld [vmem:[%s235_s1 + $0x10] sm:$0xff]  ;;  %142 = vmatprep.subr.bf16.mxu0 %v180_v3  ;;  %139 = vmatprep.mubr.msk.f32.mxu0 %vm181_vm0, %v182_v6 }
   0x2   :  { %v143_v4 = vpack.c.bf16 %v17_v1, %v16_v0  ;;  %v19_v5 = vld [vmem:[%s235_s1 + $0x18] sm:$0xff] }
   0x3   :  { %8 = vsyncpa [#allocation3], 0  ;;  %v146_v7 = vpack.c.bf16 %v19_v5, %v18_v2  ;;  %v15_v8 = vld [vmem:[%s234_s0] sm:$0xff]  ;;  %vm27_vm1 = vcmask 261120   ;;  %s183_s1 = smov [#allocation2]   ;;  %vm107_vm2 = vcmask 130048  }
   0x4   :  { %144 = vmatpush3.bf16.msra.mxu0 %v143_v4  ;;  %v123_v9 = vld [vmem:[%s236_s2] ss:$0 sm:$0xff]  ;;  %s115_s24 = sshll.u32 %s183_s1, 4  ;;  %s116_s24 = int_to_ptr.vmem [resolvable:$true] %s115_s24 }
   0x5   :  { %145 = vmatprep.subr.bf16.mxu0 %v180_v3  ;;  %s156_s0 = scalar_lea.vmem %s116_s24, 128  ;;  %p161_p1 = scmp.lt.s32.totalorder %s116_s24, %s116_s24 }
   0x6   :  { %p157_p0 = scmp.ne.s32.totalorder %s116_s24, %s156_s0  ;;  %p162_p2 = scmp.lt.s32.totalorder %s156_s0, %s156_s0 }
   0x8   :  { %147 = vmatpush3.bf16.msra.mxu0 %v146_v7  ;;  %p163_p3 = por %p162_p2, %p161_p1 }
   0xa   :  { %p164_p4 = pnand %p163_p3, %p157_p0 }
   0xb   :  { %140 = vmatmul.mubr.msk.f32.vlgmr.msra.gmra.mrb[0].mxu0 %vm27_vm1, %v15_v8 }
  0xde   :  { %v97_v10 = vpop.f32.mrb[0].mxu0 }
  0xdf   :  { %v98_v11 = vadd.f32 %v123_v9, %v97_v10  ;;  %v141_v12 = vpop.f32.mrb[1].mxu0 }
  0xe1   :  { %v125_v13 = vmul.f32 -1.442695, %v98_v11 }
  0xe3   :  { %152 = vpow2.f32 %v125_v13 }
  0xed   :  { %v153_v14 = vpop.eup %152 }
  0xee   :  { %v104_v15 = vadd.f32 1.0, %v153_v14 }
  0xf0   :  { %154 = vrcp.f32 %v104_v15 }
  0xfa   :  { %v155_v16 = vpop.eup %154 }
  0xfb   :  { %108 = vst.msk [vmem:[#allocation2] sm:$0xff] %vm107_vm2, %v155_v16 }
  0xfc   :  { %167 = shalt.err (!%p164_p4)
}
  0xfd   :  { %s168_s26 = scalar_lea.hbm %s237_s3, 128 }
  0xfe   :  { %p169_p5 = scmp.ne.s32.totalorder %s237_s3, %s168_s26  ;;  %p172_p6 = scmp.lt.u32.totalorder %s168_s26, %s237_s3 }
 0x100   :  { %p174_p7 = pnand %p172_p6, %p169_p5 }
 0x102   :  { %177 = shalt.err (!%p174_p7)
}
 0x103   :  { %118 = dma.vmem_to_hbm [thread:$0]  %s116_s24, 128, %s237_s3, [#allocation3]  }
 0x104   :  { %178 = dma.done.wait [#allocation3], 128  }
 0x105   :  { %179 = vsyncadd [#allocation3], 4294967168 }
 0x106   :  { %122 = vsyncpa [#allocation3], 1 }

</bundles_post_ra>
